<compile_context>
chip_gen: v7x
topology: tpu7x:2x2x1
jax: 0.10.0
libtpu: 0.0.40
codegen_flags: <defaults>
</compile_context>

<pallas_src>
import math

import numpy as np
import jax
import jax.numpy as jnp
from jax.experimental import pallas as pl
from jax.experimental.pallas import tpu as pltpu


# ---------------------------------------------------------------------------
# Kernels
# ---------------------------------------------------------------------------
def _plain_kernel(x_ref, freq_ref, phase_ref, o_ref):
    """x_ref: (Tb, 1) f32; freq/phase: (1, dim) f32; o_ref: (Tb, dim).

    out[r, f] = sin(x[r] * freq[f] + phase[f]) with phase in {0, pi/2}, i.e.
    the [sin | cos] sinusoidal embedding.  One full-width store per block
    (unmasked whenever dim is a multiple of 128).
    """
    ang = x_ref[...] * freq_ref[...] + phase_ref[...]
    o_ref[...] = jnp.sin(ang).astype(o_ref.dtype)


def _folded_kernel(x_ref, sel_ref, freq_ref, phase_ref, o_ref):
    """Lane-dense folded layout for dim that is not a multiple of 128.

    x_ref:   (Tr, k)   f32 -- k batch elements per row.
    sel_ref: (128, w)  f32 -- constant 0/1 selection matrix, sel[i, j] = [j//dim == i].
    freq_ref, phase_ref: (1, w) f32.
    o_ref:   (Tr, w)       -- lane j of row r is batch element r*k + j//dim,
                              feature j%dim; row-major bytes == (B, dim).

    The broadcast of each batch scalar across its dim-wide lane chunk runs on
    the otherwise-idle MXU.  x is zero-padded to 128 lanes in-register so the
    matmul is (8,128)-tile aligned on every dimension; because sel is 0/1 the
    dot reproduces x exactly (no precision loss even if the compiler uses
    bf16-pass decompositions for the f32 matmul).
    """
    tr, k = x_ref.shape
    x = x_ref[...]
    if k < 128:
        x = jnp.concatenate([x, jnp.zeros((tr, 128 - k), jnp.float32)], axis=1)
    x_exp = jnp.dot(x, sel_ref[...], preferred_element_type=jnp.float32)  # (Tr, w)
    ang = x_exp * freq_ref[...] + phase_ref[...]
    o_ref[...] = jnp.sin(ang).astype(o_ref.dtype)  # single unmasked, lane-dense store


# ---------------------------------------------------------------------------
# Constant tables (built once in the wrapper, passed as tiny grid-invariant inputs)
# ---------------------------------------------------------------------------
def _freq_phase(dim, width):
    """(1, width) frequency and phase rows; width is a multiple of dim."""
    half = dim // 2
    scale = math.log(10000.0) / (half - 1)
    base = jnp.exp(jnp.arange(half, dtype=jnp.float32) * -scale)     # matches reference
    freq_dim = jnp.concatenate([base, base])                         # (dim,)
    phase_dim = jnp.concatenate([jnp.zeros((half,), jnp.float32),
                                 jnp.full((half,), math.pi / 2, jnp.float32)])
    reps = width // dim
    return jnp.tile(freq_dim, reps)[None, :], jnp.tile(phase_dim, reps)[None, :]


def _selection_matrix(dim, width):
    """(128, width) 0/1 matrix: sel[i, j] = 1 iff j // dim == i."""
    chunk = (np.arange(width) // dim)[None, :]
    sel = (chunk == np.arange(128)[:, None]).astype(np.float32)
    return jnp.asarray(sel)


# ---------------------------------------------------------------------------
# Tiling
# ---------------------------------------------------------------------------
_TARGET_BLOCK_BYTES = 2 * 1024 * 1024  # ~2 MiB blocks: ~roofline, VMEM-safe on v5e/v7x


def _choose_row_tile(rows, row_elems, itemsize):
    """Rows per grid block.

    * multiple of 8 (16 for sub-32-bit outputs) unless it covers the full array,
    * block capped at ~2 MiB,
    * >=2 grid steps for >2 MiB outputs and >=4 for >4 MiB so the "parallel"
      row axis can shard across v7x's two TensorCores.
    The grid uses pl.cdiv, so the tile does not need to divide `rows`.
    """
    mult = 8 if itemsize >= 4 else 16
    if rows <= mult:
        return rows  # single block; dims equal full array extents
    total_bytes = rows * row_elems * itemsize
    max_rows = max(mult, _TARGET_BLOCK_BYTES // max(row_elems * itemsize, 1))
    if total_bytes > 2 * _TARGET_BLOCK_BYTES:
        max_rows = min(max_rows, max(mult, rows // 4))
    elif total_bytes > _TARGET_BLOCK_BYTES:
        max_rows = min(max_rows, max(mult, rows // 2))
    return max(mult, (min(rows, max_rows) // mult) * mult)


# ---------------------------------------------------------------------------
# Wrapper
# ---------------------------------------------------------------------------
def sinusoidal_pos_emb(x, dim, *, out_dtype=jnp.float32):
    """x: (B,) timesteps -> (B, dim) [sin | cos] embedding (matches the PyTorch module)."""
    assert dim % 2 == 0 and dim // 2 > 1, "dim must be even and >= 4"
    b = x.shape[0]
    xf = x.astype(jnp.float32)
    itemsize = jnp.dtype(out_dtype).itemsize
    params = pltpu.CompilerParams(dimension_semantics=("parallel",))

    k = 128 // math.gcd(dim, 128)          # batch elements folded per output row
    w = k * dim                            # folded row width == lcm(dim, 128)
    use_folded = (
        k > 1
        and b % k == 0
        and (b // k) >= 8                  # tiny batches: not worth folding
        and 128 * w * 4 <= (1 << 20)       # keep the selection matrix <= 1 MiB
    )

    if use_folded:
        # Lane-dense folded path: output lane width is a multiple of 128, so the
        # writeback uses full unmasked vector stores; the reshape back to
        # (B, dim) is free metadata (row-major bytes identical).
        rows = b // k
        freq, phase = _freq_phase(dim, w)
        sel = _selection_matrix(dim, w)
        x2 = xf.reshape(rows, k)
        tr = _choose_row_tile(rows, w, itemsize)
        out = pl.pallas_call(
            _folded_kernel,
            out_shape=jax.ShapeDtypeStruct((rows, w), out_dtype),
            grid=(pl.cdiv(rows, tr),),
            in_specs=[
                pl.BlockSpec((tr, k), lambda i: (i, 0)),
                pl.BlockSpec((128, w), lambda i: (0, 0)),   # grid-invariant: no re-DMA
                pl.BlockSpec((1, w), lambda i: (0, 0)),
                pl.BlockSpec((1, w), lambda i: (0, 0)),
            ],
            out_specs=pl.BlockSpec((tr, w), lambda i: (i, 0)),
            compiler_params=params,
        )(x2, sel, freq, phase)
        return out.reshape(b, dim)

    # Plain path (lane-dense whenever dim is a multiple of 128; also the
    # fallback for batches that cannot be folded).
    freq, phase = _freq_phase(dim, dim)
    x2 = xf.reshape(b, 1)
    tb = _choose_row_tile(b, dim, itemsize)
    out = pl.pallas_call(
        _plain_kernel,
        out_shape=jax.ShapeDtypeStruct((b, dim), out_dtype),
        grid=(pl.cdiv(b, tb),),
        in_specs=[
            pl.BlockSpec((tb, 1), lambda i: (i, 0)),
            pl.BlockSpec((1, dim), lambda i: (0, 0)),
            pl.BlockSpec((1, dim), lambda i: (0, 0)),
        ],
        out_specs=pl.BlockSpec((tb, dim), lambda i: (i, 0)),
        compiler_params=params,
    )(x2, freq, phase)
    return out


# ---------------------------------------------------------------------------
# Reference + test
# ---------------------------------------------------------------------------
def _reference(x, dim):
    half = dim // 2
    emb = math.log(10000.0) / (half - 1)
    emb = jnp.exp(jnp.arange(half, dtype=jnp.float32) * -emb)
    emb = x.astype(jnp.float32)[:, None] * emb[None, :]
    return jnp.concatenate((jnp.sin(emb), jnp.cos(emb)), axis=-1)


if __name__ == "__main__":
    key = jax.random.PRNGKey(0)
    cases = [
        (64, 32),    # folded lane-dense path (k=4 -> 128-lane rows), grid=1
        (528, 32),   # folded path, cdiv grid with a ragged last block
        (8, 128),    # plain path, dim % 128 == 0 -> single unmasked store
        (64, 256),   # plain path, wider multiple of 128
        (6, 32),     # plain fallback (batch too small / not divisible by k)
    ]
    for batch, dim in cases:
        kx, key = jax.random.split(key)
        # diffusion-style timesteps in [0, 1000)
        x = jax.random.uniform(kx, (batch,), dtype=jnp.float32) * 1000.0

        out = jax.block_until_ready(sinusoidal_pos_emb(x, dim))
        ref = _reference(x, dim)

        assert out.shape == (batch, dim)
        # cos is computed as sin(ang + pi/2); for |ang| up to ~1e3 the f32
        # rounding of the phase add contributes up to ~3e-5, hence atol=1e-4.
        assert jnp.allclose(out, ref, atol=1e-4, rtol=1e-5), f"mismatch at {(batch, dim)}"

    print("KERNEL_OK")
</pallas_src>

<mosaic_0001>
module attributes {stable_mosaic.version = 11 : i64} {
  func.func @_folded_kernel(%arg0: i32, %arg1: memref<16x4xf32, #tpu.memory_space<vmem>>, %arg2: memref<128x128xf32, #tpu.memory_space<vmem>>, %arg3: memref<1x128xf32, #tpu.memory_space<vmem>>, %arg4: memref<1x128xf32, #tpu.memory_space<vmem>>, %arg5: memref<16x128xf32, #tpu.memory_space<vmem>>) attributes {dimension_semantics = [#tpu.dimension_semantics<parallel>], iteration_bounds = array<i64: 1>, scalar_prefetch = 0 : i64, scratch_operands = 0 : i64, tpu.core_type = #tpu.core_type<tc>, window_params = [{transform_indices = @transform_0, window_bounds = array<i64: 16, 4>}, {pipeline_mode = #tpu.pipeline_mode<synchronous>, transform_indices = @transform_1, window_bounds = array<i64: 128, 128>}, {pipeline_mode = #tpu.pipeline_mode<synchronous>, transform_indices = @transform_2, window_bounds = array<i64: 1, 128>}, {pipeline_mode = #tpu.pipeline_mode<synchronous>, transform_indices = @transform_3, window_bounds = array<i64: 1, 128>}, {transform_indices = @transform_4, window_bounds = array<i64: 16, 128>}]} {
    %c0 = arith.constant 0 : index
    %c0_0 = arith.constant 0 : index
    %0 = vector.load %arg1[%c0, %c0_0] : memref<16x4xf32, #tpu.memory_space<vmem>>, vector<16x4xf32>
    %cst = arith.constant 0.000000e+00 : f32
    %1 = vector.broadcast %cst : f32 to vector<16x124xf32>
    %2 = tpu.concatenate %0, %1 in 1 : vector<16x4xf32>, vector<16x124xf32> -> vector<16x128xf32>
    %c0_1 = arith.constant 0 : index
    %c0_2 = arith.constant 0 : index
    %3 = vector.load %arg2[%c0_1, %c0_2] : memref<128x128xf32, #tpu.memory_space<vmem>>, vector<128x128xf32>
    %cst_3 = arith.constant dense<0.000000e+00> : vector<16x128xf32>
    %4 = tpu.matmul %2, %3, %cst_3 {dimension_numbers = #tpu.dot_dimension_numbers<[1], [0], [0], [1], [0, 0, 1, 1], [], []>} : vector<16x128xf32>, vector<128x128xf32>, vector<16x128xf32> -> vector<16x128xf32>
    %c0_4 = arith.constant 0 : index
    %c0_5 = arith.constant 0 : index
    %5 = vector.load %arg3[%c0_4, %c0_5] : memref<1x128xf32, #tpu.memory_space<vmem>>, vector<1x128xf32>
    %6 = vector.broadcast %5 : vector<1x128xf32> to vector<16x128xf32>
    %7 = arith.mulf %4, %6 : vector<16x128xf32>
    %c0_6 = arith.constant 0 : index
    %c0_7 = arith.constant 0 : index
    %8 = vector.load %arg4[%c0_6, %c0_7] : memref<1x128xf32, #tpu.memory_space<vmem>>, vector<1x128xf32>
    %9 = vector.broadcast %8 : vector<1x128xf32> to vector<16x128xf32>
    %10 = arith.addf %7, %9 : vector<16x128xf32>
    %11 = math.sin %10 : vector<16x128xf32>
    %c0_8 = arith.constant 0 : index
    %c0_9 = arith.constant 0 : index
    %12 = vector.load %arg5[%c0_8, %c0_9] : memref<16x128xf32, #tpu.memory_space<vmem>>, vector<16x128xf32>
    tpu.vector_store %arg5[%c0_8, %c0_9], %11 {strides = array<i32>} : memref<16x128xf32, #tpu.memory_space<vmem>>, vector<16x128xf32>,
    return
  }
  func.func @transform_0(%arg0: i32) -> (i32, i32) {
    %c0_i32 = arith.constant 0 : i32
    %c0_i32_0 = arith.constant 0 : i32
    return %arg0, %c0_i32 : i32, i32
  }
  func.func @transform_1(%arg0: i32) -> (i32, i32) {
    %c0_i32 = arith.constant 0 : i32
    %c0_i32_0 = arith.constant 0 : i32
    %c0_i32_1 = arith.constant 0 : i32
    return %c0_i32, %c0_i32_0 : i32, i32
  }
  func.func @transform_2(%arg0: i32) -> (i32, i32) {
    %c0_i32 = arith.constant 0 : i32
    %c0_i32_0 = arith.constant 0 : i32
    %c0_i32_1 = arith.constant 0 : i32
    return %c0_i32, %c0_i32_0 : i32, i32
  }
  func.func @transform_3(%arg0: i32) -> (i32, i32) {
    %c0_i32 = arith.constant 0 : i32
    %c0_i32_0 = arith.constant 0 : i32
    %c0_i32_1 = arith.constant 0 : i32
    return %c0_i32, %c0_i32_0 : i32, i32
  }
  func.func @transform_4(%arg0: i32) -> (i32, i32) {
    %c0_i32 = arith.constant 0 : i32
    %c0_i32_0 = arith.constant 0 : i32
    return %arg0, %c0_i32 : i32, i32
  }
}

</mosaic_0001>

<bundles_post_ra>
// kernel: tpu_custom_call.1
= control target key start
LH: loop header
LB: loop body
LE: loop exit
PB: predicated region body
PF: predicated region fallthrough
CT: control target
= control target key end

     0   :  { %9 = vsyncpa [#allocation3], 0  ;;  %s685_s0 = inlined_call_operand.vmem [shape: f32[16,4], index: 0, kind: input, shape index: {}]   ;;  %s686_s1 = inlined_call_operand.hbm [shape: f32[128,128], index: 1, kind: input, shape index: {}]   ;;  %s687_s2 = inlined_call_operand.vmem [shape: f32[1,128], index: 2, kind: input, shape index: {}]   ;;  %s688_s3 = inlined_call_operand.vmem [shape: f32[1,128], index: 3, kind: input, shape index: {}]   ;;  %s689_s4 = inlined_call_operand.hbm [shape: f32[16,128], index: 4, kind: output, shape index: {}]  }
   0x1   :  { %10 = vsyncpa [#allocation4], 0  ;;  %s544_s15 = smov [#allocation2]   ;;  %s496_s19 = scalar_lea.hbm %s686_s1, 2048 }
   0x2   :  { %s18_s16 = sshll.u32 %s544_s15, 4  ;;  %p497_p0 = scmp.ne.s32.totalorder %s686_s1, %s496_s19  ;;  %s19_s16 = int_to_ptr.vmem [resolvable:$true] %s18_s16 }
   0x3   :  { %p500_p1 = scmp.lt.u32.totalorder %s496_s19, %s686_s1 }
   0x5   :  { %p502_p2 = pnand %p500_p1, %p497_p0 }
   0x7   :  { %505 = shalt.err (!%p502_p2)
}
   0x8   :  { %s506_s24 = scalar_lea.vmem %s19_s16, 2048  ;;  %p511_p4 = scmp.lt.s32.totalorder %s19_s16, %s19_s16 }
   0x9   :  { %p507_p3 = scmp.ne.s32.totalorder %s19_s16, %s506_s24  ;;  %p512_p5 = scmp.lt.s32.totalorder %s506_s24, %s506_s24 }
   0xb   :  { %p513_p6 = por %p512_p5, %p511_p4 }
   0xd   :  { %p514_p7 = pnand %p513_p6, %p507_p3 }
   0xf   :  { %517 = shalt.err (!%p514_p7)
}
  0x10   :  { %s545_s25 = smov 128   ;;  %s546_s26 = smov 8  }
  0x11   :  { %24 = dma.hbm_to_vmem [thread:$0]  %s686_s1, 2048, %s19_s16, [#allocation3], %s545_s25, %s545_s25, %s546_s26  }
  0x12   :  { %540 = dma.done.wait [#allocation3], 2048  }
  0x13   :  { %541 = vsyncadd [#allocation3], 4294965248  ;;  %v37_v0 = vld [vmem:[#allocation2] sm:$0xff]  ;;  %v38_v1 = vld [vmem:[#allocation2 + $0x8] sm:$0xff]  ;;  %vm34_vm0 = vcmask 31744  }
  0x14   :  { %v39_v2 = vld [vmem:[#allocation2 + $0x10] sm:$0xff]  ;;  %v438_v3 = vpack.c.bf16 %v38_v1, %v37_v0  ;;  %v40_v4 = vld [vmem:[#allocation2 + $0x18] sm:$0xff]  ;;  %v41_v6 = vld [vmem:[#allocation2 + $0x20] sm:$0xff]  ;;  %v547_v54 = vmov 683565275  }
  0x15   :  { %v442_v5 = vpack.c.bf16 %v40_v4, %v39_v2  ;;  %v42_v7 = vld [vmem:[#allocation2 + $0x28] sm:$0xff]  ;;  %v32_v9 = vld [vmem:[%s685_s0] sm:$0xff]  ;;  %v44_v11 = vld [vmem:[#allocation2 + $0x38] sm:$0xff]  ;;  %v548_v58 = vmov 2475754826  }
  0x16   :  { %439 = vmatprep.subr.bf16.mxu0 %v438_v3  ;;  %v446_v8 = vpack.c.bf16 %v42_v7, %v41_v6  ;;  %v43_v10 = vld [vmem:[#allocation2 + $0x30] sm:$0xff]  ;;  %435 = vmatprep.mubr.msk.f32.mxu0 %vm34_vm0, %v32_v9  ;;  %v45_v13 = vld [vmem:[#allocation2 + $0x40] sm:$0xff]  ;;  %v46_v14 = vld [vmem:[#allocation2 + $0x48] sm:$0xff]  ;;  %v549_v60 = vmov 2131351028  }
  0x17   :  { %441 = vmatpush3.bf16.msra.mxu0 %v438_v3  ;;  %v450_v12 = vpack.c.bf16 %v44_v11, %v43_v10  ;;  %v454_v15 = vpack.c.bf16 %v46_v14, %v45_v13  ;;  %v47_v16 = vld [vmem:[#allocation2 + $0x50] sm:$0xff]  ;;  %v48_v17 = vld [vmem:[#allocation2 + $0x58] sm:$0xff]  ;;  %v49_v19 = vld [vmem:[#allocation2 + $0x60] sm:$0xff]  ;;  %v550_v62 = vmov 2102212464  }
  0x18   :  { %443 = vmatprep.subr.bf16.mxu0 %v442_v5  ;;  %v458_v18 = vpack.c.bf16 %v48_v17, %v47_v16  ;;  %v50_v20 = vld [vmem:[#allocation2 + $0x68] sm:$0xff]  ;;  %v51_v22 = vld [vmem:[#allocation2 + $0x70] sm:$0xff]  ;;  %v52_v23 = vld [vmem:[#allocation2 + $0x78] sm:$0xff]  ;;  %v551_v0 = vmov 920167782  }
  0x19   :  { %v462_v21 = vpack.c.bf16 %v50_v20, %v49_v19  ;;  %v466_v24 = vpack.c.bf16 %v52_v23, %v51_v22  ;;  %v33_v25 = vld [vmem:[%s685_s0 + $0x8] sm:$0xff]  ;;  %v375_v26 = vld [vmem:[%s687_s2] ss:$0 sm:$0xff]  ;;  %v552_v7 = vmov 1326507024   ;;  %s553_s0 = smov [#allocation5]  }
  0x1a   :  { %v376_v28 = vld [vmem:[%s688_s3] ss:$0 sm:$0xff]  ;;  %s361_s2 = sshll.u32 %s553_s0, 4  ;;  %s362_s2 = int_to_ptr.vmem [resolvable:$true] %s361_s2 }
  0x1b   :  { %445 = vmatpush3.bf16.msra.mxu0 %v442_v5  ;;  %s518_s3 = scalar_lea.vmem %s362_s2, 256  ;;  %p523_p9 = scmp.lt.s32.totalorder %s362_s2, %s362_s2 }
  0x1c   :  { %447 = vmatprep.subr.bf16.mxu0 %v446_v8  ;;  %p519_p8 = scmp.ne.s32.totalorder %s362_s2, %s518_s3  ;;  %p524_p10 = scmp.lt.s32.totalorder %s518_s3, %s518_s3 }
  0x1e   :  { %p525_p11 = por %p524_p10, %p523_p9 }
  0x1f   :  { %449 = vmatpush3.bf16.msra.mxu0 %v446_v8 }
  0x20   :  { %451 = vmatprep.subr.bf16.mxu0 %v450_v12  ;;  %p526_p12 = pnand %p525_p11, %p519_p8 }
  0x23   :  { %453 = vmatpush3.bf16.msra.mxu0 %v450_v12 }
  0x24   :  { %455 = vmatprep.subr.bf16.mxu0 %v454_v15 }
  0x27   :  { %457 = vmatpush3.bf16.msra.mxu0 %v454_v15 }
  0x28   :  { %459 = vmatprep.subr.bf16.mxu0 %v458_v18 }
  0x2b   :  { %461 = vmatpush3.bf16.msra.mxu0 %v458_v18 }
  0x2c   :  { %463 = vmatprep.subr.bf16.mxu0 %v462_v21 }
  0x2f   :  { %465 = vmatpush3.bf16.msra.mxu0 %v462_v21 }
  0x30   :  { %467 = vmatprep.subr.bf16.mxu0 %v466_v24 }
  0x33   :  { %469 = vmatpush3.bf16.msra.mxu0 %v466_v24 }
  0x36   :  { %436 = vmatmul.mubr.msk.f32.vlgmr.msra.gmra.mrb[0].mxu0 %vm34_vm0, %v33_v25 }
 0x109   :  { %v437_v27 = vpop.f32.mrb[0].mxu0 }
 0x10a   :  { %v136_v29 = vmul.f32 %v437_v27, %v375_v26  ;;  %v119_v30 = vpop.f32.mrb[1].mxu0 }
 0x10b   :  { %v135_v31 = vmul.f32 %v375_v26, %v119_v30 }
 0x10c   :  { %v608_v32 = vadd.f32 %v376_v28, %v136_v29 }
 0x10d   :  { %v610_v33 = vadd.f32 %v376_v28, %v135_v31 }
 0x10e   :  { %v250_v34 = vand.u32 2147483647, %v608_v32  ;;  %v253_v35 = vand.u32 2139095040, %v608_v32  ;;  %vm252_vm15 = vcmp.lt.s32.totalorder %v608_v32, 0 }
 0x10f   :  { %v149_v36 = vand.u32 2139095040, %v610_v33  ;;  %v146_v39 = vand.u32 2147483647, %v610_v33 }
 0x110   :  { %v254_v37 = vshrl.u32 %v253_v35, 23  ;;  %v257_v38 = vand.u32 8388607, %v250_v34  ;;  %vm251_vm0 = vcmp.le.f32.partialorder %v250_v34, 0.7853982 }
 0x111   :  { %v150_v40 = vshrl.u32 %v149_v36, 23  ;;  %v620_v45 = vand.u32 8388607, %v146_v39 }
 0x112   :  { %v381_v41 = vadd.s32 4294967169, %v254_v37  ;;  %v258_v44 = vor.u32 8388608, %v257_v38 }
 0x113   :  { %v377_v42 = vadd.s32 4294967169, %v150_v40  ;;  %v154_v52 = vor.u32 8388608, %v620_v45 }
 0x114   :  { %v260_v43 = vadd.s32 1, %v381_v41  ;;  %v622_v51 = vshll.u32 %v258_v44, 8 }
 0x115   :  { %v156_v46 = vadd.s32 1, %v377_v42 }
 0x116   :  { %vm261_vm1 = vcmp.gt.s32.totalorder %v260_v43, 0 }
 0x117   :  { %v262_v47 = vsel %vm261_vm1, %v260_v43, 0  ;;  %vm157_vm2 = vcmp.gt.s32.totalorder %v156_v46, 0  ;;  %vm148_vm1 = vcmp.lt.s32.totalorder %v610_v33, 0 }
 0x118   :  { %v263_v48 = vshrl.u32 %v262_v47, 5  ;;  %v264_v49 = vand.u32 31, %v262_v47  ;;  %v158_v50 = vsel %vm157_vm2, %v156_v46, 0  ;;  %v194_v46 = vshll.u32 %v154_v52, 8 }
 0x119   :  { %v625_v56 = vshrl.u32 %v158_v50, 5  ;;  %v160_v57 = vand.u32 31, %v158_v50  ;;  %vm147_vm2 = vcmp.le.f32.partialorder %v146_v39, 0.7853982 }
 0x11a   :  { %v265_v53 = vsub.s32 32, %v264_v49  ;;  %v267_v55 = vshll.u32 %v547_v54, %v264_v49  ;;  %v270_v59 = vshll.u32 %v548_v58, %v264_v49  ;;  %v273_v61 = vshll.u32 %v549_v60, %v264_v49 }
 0x11b   :  { %v276_v63 = vshll.u32 %v550_v62, %v264_v49  ;;  %v279_v1 = vshll.u32 %v551_v0, %v264_v49  ;;  %vm282_vm3 = vcmp.lt.s32.totalorder %v263_v48, 1  ;;  %vm283_vm4 = vcmp.lt.s32.totalorder %v263_v48, 2 }
 0x11c   :  { %v268_v2 = vshrl.u32 %v548_v58, %v265_v53  ;;  %v271_v3 = vshrl.u32 %v549_v60, %v265_v53  ;;  %v274_v4 = vshrl.u32 %v550_v62, %v265_v53  ;;  %v266_v5 = vshrl.u32 %v547_v54, %v265_v53 }
 0x11d   :  { %v277_v6 = vshrl.u32 %v551_v0, %v265_v53  ;;  %v280_v8 = vshrl.u32 %v552_v7, %v265_v53  ;;  %v161_v12 = vsub.s32 32, %v160_v57  ;;  %vm284_vm5 = vcmp.lt.s32.totalorder %v263_v48, 3 }
 0x11e   :  { %v269_v9 = vor.u32 %v268_v2, %v267_v55  ;;  %v272_v10 = vor.u32 %v271_v3, %v270_v59  ;;  %v275_v11 = vor.u32 %v274_v4, %v273_v61  ;;  %vm285_vm6 = vcmp.lt.s32.totalorder %v263_v48, 4 }
 0x11f   :  { %v278_v13 = vor.u32 %v277_v6, %v276_v63  ;;  %v281_v14 = vor.u32 %v280_v8, %v279_v1  ;;  %v163_v22 = vshll.u32 %v547_v54, %v160_v57  ;;  %v164_v25 = vshrl.u32 %v548_v58, %v161_v12 }
 0x120   :  { %v286_v15 = vsel %vm282_vm3, %v266_v5, %v269_v9  ;;  %v287_v16 = vsel %vm285_vm6, %v275_v11, 2102212464  ;;  %v290_v17 = vsel %vm282_vm3, %v269_v9, %v272_v10  ;;  %v294_v18 = vsel %vm282_vm3, %v272_v10, %v275_v11 }
 0x121   :  { %v288_v19 = vsel %vm284_vm5, %v272_v10, %v287_v16  ;;  %v291_v20 = vsel %vm285_vm6, %v278_v13, 920167782  ;;  %v295_v21 = vsel %vm285_vm6, %v281_v14, 1326507024  ;;  %v166_v26 = vshll.u32 %v548_v58, %v160_v57 }
 0x122   :  { %v292_v23 = vsel %vm284_vm5, %v275_v11, %v291_v20  ;;  %v296_v24 = vsel %vm284_vm5, %v278_v13, %v295_v21  ;;  %v289_v27 = vsel %vm283_vm4, %v286_v15, %v288_v19  ;;  %v167_v30 = vshrl.u32 %v549_v60, %v161_v12 }
 0x123   :  { %v293_v28 = vsel %vm283_vm4, %v290_v17, %v292_v23  ;;  %v297_v29 = vsel %vm283_vm4, %v294_v18, %v296_v24  ;;  %v165_v38 = vor.u32 %v164_v25, %v163_v22  ;;  %v169_v41 = vshll.u32 %v549_v60, %v160_v57 }
 0x124   :  { %v634_v31 = vmul.u32.u64.low %v622_v51, %v297_v29  ;;  %v635_v35 = vmul.u32.u64.high %v622_v51, %v297_v29, %v634_v31  ;;  %v638_v36 = vmul.u32.u64.low %v622_v51, %v293_v28  ;;  %v639_v37 = vmul.u32.u64.high %v622_v51, %v293_v28, %v638_v36 }
 0x125   :  { %v168_v40 = vor.u32 %v167_v30, %v166_v26  ;;  %v170_v42 = vshrl.u32 %v550_v62, %v161_v12  ;;  %v172_v43 = vshll.u32 %v550_v62, %v160_v57  ;;  %v173_v44 = vshrl.u32 %v551_v0, %v161_v12 }
 0x126   :  { %v176_v45 = vshrl.u32 %v552_v7, %v161_v12  ;;  %v305_v47 = vmul.u32 %v622_v51, %v289_v27  ;;  %v162_v48 = vshrl.u32 %v547_v54, %v161_v12  ;;  %v175_v50 = vshll.u32 %v551_v0, %v160_v57 }
 0x127   :  { %v171_v49 = vor.u32 %v170_v42, %v169_v41  ;;  %vm307_vm7 = vc.u32 %v635_v35, %v638_v36  ;;  %v308_v53 = vadd.s32 1, %v639_v37  ;;  %v174_v55 = vor.u32 %v173_v44, %v172_v43 }
 0x128   :  { %vm178_vm8 = vcmp.lt.s32.totalorder %v625_v56, 1  ;;  %v177_v58 = vor.u32 %v176_v45, %v175_v50  ;;  %vm180_vm9 = vcmp.lt.s32.totalorder %v625_v56, 3  ;;  %vm181_vm10 = vcmp.lt.s32.totalorder %v625_v56, 4 }
 0x129   :  { %v186_v59 = vsel %vm178_vm8, %v165_v38, %v168_v40  ;;  %v309_v52 = vsel %vm307_vm7, %v308_v53, %v639_v37  ;;  %v183_v60 = vsel %vm181_vm10, %v171_v49, 2102212464  ;;  %v187_v51 = vsel %vm181_vm10, %v174_v55, 920167782 }
 0x12a   :  { %v190_v54 = vsel %vm178_vm8, %v168_v40, %v171_v49  ;;  %v310_v61 = vadd.s32 %v309_v52, %v305_v47  ;;  %vm179_vm11 = vcmp.lt.s32.totalorder %v625_v56, 2  ;;  %v188_v57 = vsel %vm180_vm9, %v171_v49, %v187_v51 }
 0x12b   :  { %v191_v62 = vsel %vm181_vm10, %v177_v58, 1326507024  ;;  %v182_v63 = vsel %vm178_vm8, %v162_v48, %v165_v38  ;;  %v184_v0 = vsel %vm180_vm9, %v168_v40, %v183_v60  ;;  %v189_v1 = vsel %vm179_vm11, %v186_v59, %v188_v57 }
 0x12c   :  { %v192_v2 = vsel %vm180_vm9, %v174_v55, %v191_v62  ;;  %v311_v3 = vadd.s32 536870912, %v310_v61  ;;  %v649_v5 = vmul.u32.u64.low %v194_v46, %v189_v1  ;;  %v650_v6 = vmul.u32.u64.high %v194_v46, %v189_v1, %v649_v5 }
 0x12d   :  { %v193_v4 = vsel %vm179_vm11, %v190_v54, %v192_v2  ;;  %v185_v10 = vsel %vm179_vm11, %v182_v63, %v184_v0  ;;  %v306_v26 = vadd.s32 %v638_v36, %v635_v35  ;;  %vm342_vm6 = vweird.f32 %v608_v32 }
 0x12e   :  { %v652_v7 = vmul.u32.u64.low %v194_v46, %v193_v4  ;;  %v653_v8 = vmul.u32.u64.high %v194_v46, %v193_v4, %v652_v7  ;;  %v312_v9 = vshrl.u32 %v311_v3, 30  ;;  %v204_v12 = vadd.s32 1, %v650_v6 }
 0x12f   :  { %v201_v56 = vmul.u32 %v194_v46, %v185_v10  ;;  %vm238_vm10 = vweird.f32 %v610_v33 }
 0x130   :  { %v313_v11 = vshll.u32 %v312_v9, 30  ;;  %vm203_vm12 = vc.u32 %v653_v8, %v649_v5  ;;  %v202_v47 = vadd.s32 %v649_v5, %v653_v8  ;;  %v336_v36 = vsub.s32 4, %v312_v9 }
 0x131   :  { %v205_v14 = vsel %vm203_vm12, %v204_v12, %v650_v6 }
 0x132   :  { %v314_v13 = vsub.s32 %v310_v61, %v313_v11  ;;  %v206_v15 = vadd.s32 %v205_v14, %v201_v56  ;;  %v337_v51 = vsel %vm252_vm15, %v336_v36, %v312_v9 }
 0x133   :  { %v339_v63 = vsel %vm251_vm0, 0, %v337_v51 }
 0x134   :  { %v316_v16 = vsub.s32 0, %v314_v13  ;;  %v207_v17 = vadd.s32 536870912, %v206_v15  ;;  %v343_v2 = vadd.s32 3, %v339_v63 }
 0x136   :  { %v382_v18 = vmin.u32 %v316_v16, %v314_v13  ;;  %v208_v19 = vshrl.u32 %v207_v17, 30  ;;  %v344_v6 = vand.u32 3, %v343_v2 }
 0x138   :  { %v318_v20 = vclz %v382_v18  ;;  %v209_v21 = vshll.u32 %v208_v19, 30  ;;  %v232_v1 = vsub.s32 4, %v208_v19  ;;  %vm349_vm3 = vcmp.eq.s32.totalorder %v344_v6, 2 }
 0x139   :  { %vm346_vm4 = vcmp.eq.s32.totalorder %v344_v6, 0  ;;  %vm345_vm5 = vcmp.lt.s32.totalorder %v344_v6, 2 }
 0x13a   :  { %v383_v22 = vadd.s32 4294967294, %v318_v20  ;;  %v210_v23 = vsub.s32 %v206_v15, %v209_v21  ;;  %v233_v34 = vsel %vm148_vm1, %v232_v1, %v208_v19 }
 0x13b   :  { %v235_v8 = vsel %vm147_vm2, 0, %v233_v34 }
 0x13c   :  { %vm384_vm13 = vcmp.lt.s32.totalorder %v383_v22, 0  ;;  %v212_v25 = vsub.s32 0, %v210_v23  ;;  %v239_v12 = vadd.s32 3, %v235_v8 }
 0x13d   :  { %v321_v24 = vsel %vm384_vm13, 0, %v383_v22 }
 0x13e   :  { %v322_v27 = vsub.s32 32, %v321_v24  ;;  %v326_v28 = vsub.s32 4294967266, %v321_v24  ;;  %v378_v29 = vmin.u32 %v212_v25, %v210_v23  ;;  %v323_v30 = vshll.u32 %v314_v13, %v321_v24 }
 0x13f   :  { %v240_v15 = vand.u32 3, %v239_v12 }
 0x140   :  { %v324_v31 = vshrl.u32 %v306_v26, %v322_v27  ;;  %v327_v37 = vadd.s32 127, %v326_v28  ;;  %v214_v38 = vclz %v378_v29 }
 0x141   :  { %vm245_vm7 = vcmp.eq.s32.totalorder %v240_v15, 2  ;;  %vm242_vm8 = vcmp.eq.s32.totalorder %v240_v15, 0  ;;  %vm241_vm9 = vcmp.lt.s32.totalorder %v240_v15, 2 }
 0x142   :  { %v325_v40 = vor.u32 %v324_v31, %v323_v30  ;;  %v328_v41 = vshll.u32 %v327_v37, 23  ;;  %v379_v42 = vadd.s32 4294967294, %v214_v38 }
 0x144   :  { %v329_v43 = vor.u32 4788187, %v328_v41  ;;  %vm380_vm14 = vcmp.lt.s32.totalorder %v379_v42, 0  ;;  %v332_v45 = vcvt.s32.f32 %v325_v40 }
 0x145   :  { %v217_v46 = vsel %vm380_vm14, 0, %v379_v42 }
 0x146   :  { %v330_v44 = vand.u32 2147483647, %v329_v43  ;;  %v218_v48 = vsub.s32 32, %v217_v46  ;;  %v222_v49 = vsub.s32 4294967266, %v217_v46  ;;  %v219_v50 = vshll.u32 %v210_v23, %v217_v46 }
 0x148   :  { %v333_v35 = vmul.f32 %v332_v45, %v330_v44  ;;  %v220_v53 = vshrl.u32 %v202_v47, %v218_v48  ;;  %v223_v55 = vadd.s32 127, %v222_v49 }
 0x14a   :  { %v334_v58 = vxor.u32 2147483648, %v333_v35  ;;  %v221_v59 = vor.u32 %v220_v53, %v219_v50  ;;  %v224_v52 = vshll.u32 %v223_v55, 23 }
 0x14c   :  { %v335_v60 = vsel %vm252_vm15, %v334_v58, %v333_v35  ;;  %v225_v54 = vor.u32 4788187, %v224_v52  ;;  %v228_v62 = vcvt.s32.f32 %v221_v59 }
 0x14d   :  { %v338_v61 = vsel %vm251_vm0, %v608_v32, %v335_v60 }
 0x14e   :  { %488 = vcosq.f32 %v338_v61  ;;  %v226_v57 = vand.u32 2147483647, %v225_v54 }
 0x14f   :  { %490 = vsinq.f32 %v338_v61 }
 0x150   :  { %v229_v0 = vmul.f32 %v228_v62, %v226_v57 }
 0x152   :  { %v230_v3 = vxor.u32 2147483648, %v229_v0 }
 0x154   :  { %v231_v4 = vsel %vm148_vm1, %v230_v3, %v229_v0 }
 0x155   :  { %v234_v5 = vsel %vm147_vm2, %v610_v33, %v231_v4 }
 0x156   :  { %492 = vcosq.f32 %v234_v5 }
 0x157   :  { %494 = vsinq.f32 %v234_v5 }
 0x158   :  { %v489_v7 = vpop.eup %488 }
 0x159   :  { %v491_v9 = vpop.eup %490  ;;  %v350_v10 = vxor.u32 2147483648, %v489_v7 }
 0x15a   :  { %v347_v11 = vxor.u32 2147483648, %v491_v9 }
 0x15b   :  { %v351_v56 = vsel %vm349_vm3, %v350_v10, %v491_v9 }
 0x15c   :  { %v348_v13 = vsel %vm346_vm4, %v489_v7, %v347_v11 }
 0x15d   :  { %v352_v39 = vsel %vm345_vm5, %v348_v13, %v351_v56 }
 0x15e   :  { %v353_v14 = vsel %vm342_vm6, nan, %v352_v39 }
 0x15f   :  { %355 = vst [vmem:[#allocation5 + $0x8] sm:$0xff] %v353_v14 }
 0x160   :  { %v493_v16 = vpop.eup %492 }
 0x161   :  { %v495_v17 = vpop.eup %494  ;;  %v246_v18 = vxor.u32 2147483648, %v493_v16 }
 0x162   :  { %v243_v19 = vxor.u32 2147483648, %v495_v17 }
 0x163   :  { %v247_v20 = vsel %vm245_vm7, %v246_v18, %v495_v17 }
 0x164   :  { %v244_v21 = vsel %vm242_vm8, %v493_v16, %v243_v19 }
 0x165   :  { %v248_v22 = vsel %vm241_vm9, %v244_v21, %v247_v20 }
 0x166   :  { %v249_v32 = vsel %vm238_vm10, nan, %v248_v22 }
 0x167   :  { %354 = vst [vmem:[#allocation5] sm:$0xff] %v249_v32 }
 0x168   :  { %529 = shalt.err (!%p526_p12)
}
 0x169   :  { %s530_s12 = scalar_lea.hbm %s689_s4, 256 }
 0x16a   :  { %p531_p13 = scmp.ne.s32.totalorder %s689_s4, %s530_s12  ;;  %p534_p0 = scmp.lt.u32.totalorder %s530_s12, %s689_s4 }
 0x16c   :  { %p536_p1 = pnand %p534_p0, %p531_p13 }
 0x16e   :  { %539 = shalt.err (!%p536_p1)
}
 0x16f   :  { %367 = dma.vmem_to_hbm [thread:$0]  %s362_s2, 256, %s689_s4, [#allocation4], %s545_s25, %s545_s25, %s546_s26  }
 0x170   :  { %542 = dma.done.wait [#allocation4], 256  }
 0x171   :  { %543 = vsyncadd [#allocation4], 4294967040 }
 0x172   :  { %371 = vsyncpa [#allocation3], 1 }
 0x173   :  { %372 = vsyncpa [#allocation4], 1 }

</bundles_post_ra>
